<compile_context>
chip_gen: v6e
topology: v6e:2x2x1
jax: 0.10.0
libtpu: 0.0.40
codegen_flags: <defaults>
</compile_context>

<pallas_src>
import functools

import jax
import jax.numpy as jnp
from jax.experimental import pallas as pl
from jax.experimental.pallas import tpu as pltpu


def _round_up(a, m):
    return (a + m - 1) // m * m


def conv2dmod_kernel(x_ref, y_ref, w_ref, o_ref, xcat_ref, acc_ref, *,
                     k, Wp, Sout_pad, demod, eps, compute_dtype):
    """One (batch, O-tile) grid step.

    x_ref:    (1, Cp, Spf)         zero-padded image, flattened spatial (compute dtype)
    y_ref:    (1, 1, k*Cp)         style vector, channel-padded + tiled k times (f32)
    w_ref:    (k, o_tile, k*Cp)    base weight, layout [kh, o, kw*Cp + c] (f32)
    o_ref:    (1, o_tile, Sout_pad)
    xcat_ref: (k*Cp, Lx)           VMEM scratch: kw-concatenated activation
    acc_ref:  (o_tile, Sout_pad)   VMEM scratch: f32 accumulator
    """
    Cp = x_ref.shape[1]
    Lx = xcat_ref.shape[1]

    # --- modulate (and demodulate) the SMALL weight in f32 (VPU + EUP rsqrt) -------
    y1 = 1.0 + y_ref[...]                                   # (1, 1, k*Cp)
    wmod = w_ref[...] * y1                                   # (k, o_tile, k*Cp)
    if demod:
        ss = jnp.sum(wmod * wmod, axis=2, keepdims=True)     # lane reduce -> (k, o_tile, 1)
        ss = jnp.sum(ss, axis=0, keepdims=True)              # (1, o_tile, 1)
        wmod = wmod * jax.lax.rsqrt(ss + eps)
    wmod = wmod.astype(compute_dtype)                        # bf16 into the MXU

    # --- build the kw-concatenated activation ONCE per image -----------------------
    # xcat[kw*Cp + c, t] = x[c, t + kw]: k unaligned lane slices instead of k*k.
    # The O-tile grid axis is "arbitrary" (never split across cores), so building it
    # only at j == 0 and reusing it for the remaining O tiles is safe.
    @pl.when(pl.program_id(1) == 0)
    def _build_xcat():
        for kw in range(k):
            xcat_ref[kw * Cp:(kw + 1) * Cp, :] = x_ref[0, :, kw:kw + Lx]

    # --- k matmuls with contraction k*Cp, f32 accumulation in VMEM scratch ---------
    # TODO(synk): for large W make Wp a multiple of 128 so kh*Wp is a lane-aligned
    # (free) slice; at small W the roundup would inflate HBM traffic instead.
    for kh in range(k):
        xs = xcat_ref[:, kh * Wp:kh * Wp + Sout_pad]          # (k*Cp, Sout_pad)
        part = jnp.dot(wmod[kh], xs, preferred_element_type=jnp.float32)
        if kh == 0:
            acc_ref[...] = part
        else:
            acc_ref[...] += part

    o_ref[0] = acc_ref[...].astype(o_ref.dtype)


def conv2dmod_pallas(x, y, weight, *, demod=True, eps=1e-8, stride=1, dilation=1,
                     compute_dtype=jnp.bfloat16, o_tile=None):
    """x: (N, C, H, W); y: (N, C); weight: (O, C, k, k).  Returns (N, O, H, W)."""
    N, C, H, W = x.shape
    O, Cin, k, k2 = weight.shape
    assert Cin == C and k == k2

    # Same-padding formula from the module.  The PyTorch forward only uses
    # stride/dilation inside this formula; F.conv2d itself runs stride=1, dilation=1.
    p = ((H - 1) * (stride - 1) + dilation * (k - 1)) // 2
    Wp = W + 2 * p
    assert H + 2 * p - k + 1 == H, "Conv2DMod needs a size-preserving configuration"

    sub = 16 if compute_dtype == jnp.bfloat16 else 8   # sublane packing of compute dtype
    Cp = _round_up(C, sub)                             # tile-aligned channel count

    Sout = H * Wp                                      # valid flat output length
    Sout_pad = _round_up(Sout, 128)                    # lane-dense (unmasked) stores
    Lx = _round_up((k - 1) * Wp + Sout_pad, 128)       # xcat scratch width
    need_flat = (k - 1) + Lx                           # max flat input index read + 1

    base_rows = H + 2 * p
    deficit = max(0, need_flat - base_rows * Wp)
    extra_rows = -(-deficit // Wp)                     # extra zero rows at the bottom
    Spf = (base_rows + extra_rows) * Wp

    # Single fused pad/cast pass: channels -> Cp, rows -> (p, p + extra), cols -> (p, p).
    xp = jnp.pad(x.astype(compute_dtype),
                 ((0, 0), (0, Cp - C), (p, p + extra_rows), (p, p)))
    xpf = xp.reshape(N, Cp, Spf)

    # Weight (O, C, kh, kw) -> (kh, O, kw*Cp + c).  Modulation math stays f32.
    # TODO(synk): on v7x store the base weight as bf16 and single-buffer it
    # (pipeline_mode=pl.Buffered(1)) to halve its VMEM/HBM footprint.
    wt = jnp.transpose(weight, (2, 0, 3, 1)).astype(jnp.float32)   # (kh, O, kw, C)
    wt = jnp.pad(wt, ((0, 0), (0, 0), (0, 0), (0, Cp - C)))
    w_r = wt.reshape(k, O, k * Cp)

    # Style vector: channel-pad then tile k times so y_t[kw*Cp + c] == y[c].
    y_p = jnp.pad(y.astype(jnp.float32), ((0, 0), (0, Cp - C)))
    y_t = jnp.tile(y_p, (1, k)).reshape(N, 1, k * Cp)

    # O tiling keeps per-step VMEM bounded for large models (v7x: 64 MiB physical).
    if o_tile is None:
        o_tile = O if O <= 256 else next(
            (t for t in range(256, 7, -8) if O % t == 0), O)
    assert O % o_tile == 0 and (o_tile == O or o_tile % 8 == 0)
    J = O // o_tile

    kernel = functools.partial(
        conv2dmod_kernel, k=k, Wp=Wp, Sout_pad=Sout_pad,
        demod=demod, eps=float(eps), compute_dtype=compute_dtype)

    out_flat = pl.pallas_call(
        kernel,
        out_shape=jax.ShapeDtypeStruct((N, O, Sout_pad), x.dtype),
        grid_spec=pltpu.PrefetchScalarGridSpec(
            num_scalar_prefetch=0,
            grid=(N, J),
            in_specs=[
                pl.BlockSpec((1, Cp, Spf), lambda b, j: (b, 0, 0)),       # padded image
                pl.BlockSpec((1, 1, k * Cp), lambda b, j: (b, 0, 0)),     # style vector
                pl.BlockSpec((k, o_tile, k * Cp), lambda b, j: (0, j, 0)),  # base weight
            ],
            out_specs=pl.BlockSpec((1, o_tile, Sout_pad), lambda b, j: (b, j, 0)),
            scratch_shapes=[
                pltpu.VMEM((k * Cp, Lx), compute_dtype),        # kw-concatenated act.
                pltpu.VMEM((o_tile, Sout_pad), jnp.float32),    # f32 accumulator
            ],
        ),
        compiler_params=pltpu.CompilerParams(
            # Batch carries megacore parallelism; O-tile axis is "arbitrary" so the
            # xcat scratch built at j == 0 can be reused by later O tiles.
            dimension_semantics=("parallel", "arbitrary"),
            vmem_limit_bytes=64 * 1024 * 1024,
        ),
    )(xpf, y_t, w_r)

    # Drop the padded lanes / junk columns, back to NCHW.
    # TODO(synk): fuse this slice into the consumer (or keep the padded layout) to
    # avoid one extra HBM pass over the output.
    return out_flat[:, :, :Sout].reshape(N, O, H, Wp)[:, :, :, :W]


def conv2dmod_reference(x, y, weight, *, demod=True, eps=1e-8, stride=1, dilation=1):
    """Pure-JAX f32 reference matching PyTorch Conv2DMod.forward."""
    N, C, H, W = x.shape
    O, _, k, _ = weight.shape
    w1 = y[:, None, :, None, None]
    weights = weight[None] * (w1 + 1.0)                          # (N, O, C, k, k)
    if demod:
        d = jax.lax.rsqrt(
            jnp.sum(weights ** 2, axis=(2, 3, 4), keepdims=True) + eps)
        weights = weights * d
    p = ((H - 1) * (stride - 1) + dilation * (k - 1)) // 2

    def one(xb, wb):
        return jax.lax.conv_general_dilated(
            xb[None], wb, window_strides=(1, 1),
            padding=[(p, p), (p, p)],
            dimension_numbers=("NCHW", "OIHW", "NCHW"),
            precision=jax.lax.Precision.HIGHEST)[0]

    return jax.vmap(one)(x, weights)                             # (N, O, H, W)


if __name__ == "__main__":
    key = jax.random.PRNGKey(0)
    N, Cin, Cout, H, W, K = 2, 4, 8, 16, 16, 3

    k_x, k_y, k_w = jax.random.split(key, 3)
    x = jax.random.normal(k_x, (N, Cin, H, W), dtype=jnp.float32)
    y = jax.random.normal(k_y, (N, Cin), dtype=jnp.float32)
    weight = jax.random.normal(k_w, (Cout, Cin, K, K), dtype=jnp.float32)
    weight = weight * (2.0 / (Cin * K * K)) ** 0.5               # kaiming-style scale

    ref = conv2dmod_reference(x, y, weight, demod=True, eps=1e-8)

    # f32 compute path: tight structural check against the f32 reference.
    fn_f32 = jax.jit(functools.partial(conv2dmod_pallas, demod=True, eps=1e-8,
                                       compute_dtype=jnp.float32))
    out_f32 = jax.block_until_ready(fn_f32(x, y, weight))
    assert out_f32.shape == (N, Cout, H, W)
    assert jnp.allclose(out_f32, ref, atol=1e-4, rtol=1e-4), (
        f"f32 mismatch vs reference, max abs diff {jnp.max(jnp.abs(out_f32 - ref))}")

    # bf16 compute path (default, MXU-native): looser tolerance for bf16 inputs.
    fn_bf16 = jax.jit(functools.partial(conv2dmod_pallas, demod=True, eps=1e-8,
                                        compute_dtype=jnp.bfloat16))
    out_bf16 = jax.block_until_ready(fn_bf16(x, y, weight))
    assert out_bf16.shape == (N, Cout, H, W)
    assert jnp.allclose(out_bf16, ref, atol=5e-2, rtol=5e-2), (
        f"bf16 mismatch vs reference, max abs diff {jnp.max(jnp.abs(out_bf16 - ref))}")

    print("KERNEL_OK")
</pallas_src>

<mosaic_0001>
module attributes {stable_mosaic.version = 11 : i64} {
  func.func @conv2dmod_kernel(%arg0: i32, %arg1: i32, %arg2: memref<1x8x522xf32, #tpu.memory_space<vmem>>, %arg3: memref<1x1x24xf32, #tpu.memory_space<vmem>>, %arg4: memref<3x8x24xf32, #tpu.memory_space<vmem>>, %arg5: memref<1x8x384xf32, #tpu.memory_space<vmem>>, %arg6: memref<24x512xf32, #tpu.memory_space<vmem>>, %arg7: memref<8x384xf32, #tpu.memory_space<vmem>>) attributes {dimension_semantics = [#tpu.dimension_semantics<parallel>, #tpu.dimension_semantics<arbitrary>], iteration_bounds = array<i64: 2, 1>, scalar_prefetch = 0 : i64, scratch_operands = 2 : i64, tpu.core_type = #tpu.core_type<tc>, window_params = [{transform_indices = @transform_0, window_bounds = array<i64: 1, 8, 522>}, {transform_indices = @transform_1, window_bounds = array<i64: 1, 1, 24>}, {transform_indices = @transform_2, window_bounds = array<i64: 3, 8, 24>}, {transform_indices = @transform_3, window_bounds = array<i64: 1, 8, 384>}]} {
    %c0 = arith.constant 0 : index
    %c0_0 = arith.constant 0 : index
    %c0_1 = arith.constant 0 : index
    %0 = vector.load %arg3[%c0, %c0_0, %c0_1] : memref<1x1x24xf32, #tpu.memory_space<vmem>>, vector<1x1x24xf32>
    %cst = arith.constant 1.000000e+00 : f32
    %1 = vector.broadcast %cst : f32 to vector<1x1x24xf32>
    %2 = arith.addf %1, %0 : vector<1x1x24xf32>
    %c0_2 = arith.constant 0 : index
    %c0_3 = arith.constant 0 : index
    %c0_4 = arith.constant 0 : index
    %3 = vector.load %arg4[%c0_2, %c0_3, %c0_4] : memref<3x8x24xf32, #tpu.memory_space<vmem>>, vector<3x8x24xf32>
    %4 = vector.broadcast %2 : vector<1x1x24xf32> to vector<3x8x24xf32>
    %5 = arith.mulf %3, %4 : vector<3x8x24xf32>
    %6 = arith.mulf %5, %5 : vector<3x8x24xf32>
    %cst_5 = arith.constant dense<0.000000e+00> : vector<3x8xf32>
    %7 = vector.multi_reduction <add>, %6, %cst_5 [2] : vector<3x8x24xf32> to vector<3x8xf32>
    %8 = vector.shape_cast %7 : vector<3x8xf32> to vector<3x8x1xf32>
    %cst_6 = arith.constant dense<0.000000e+00> : vector<8x1xf32>
    %9 = vector.multi_reduction <add>, %8, %cst_6 [0] : vector<3x8x1xf32> to vector<8x1xf32>
    %10 = vector.shape_cast %9 : vector<8x1xf32> to vector<1x8x1xf32>
    %cst_7 = arith.constant 9.99999993E-9 : f32
    %11 = vector.broadcast %cst_7 : f32 to vector<1x8x1xf32>
    %12 = arith.addf %10, %11 : vector<1x8x1xf32>
    %13 = math.rsqrt %12 : vector<1x8x1xf32>
    %14 = vector.broadcast %13 : vector<1x8x1xf32> to vector<3x8x24xf32>
    %15 = arith.mulf %5, %14 : vector<3x8x24xf32>
    %c0_i32 = arith.constant 0 : i32
    %16 = arith.cmpi eq, %arg1, %c0_i32 : i32
    %17 = arith.extui %16 : i1 to i32
    %c0_i32_8 = arith.constant 0 : i32
    %18 = arith.cmpi ne, %17, %c0_i32_8 : i32
    scf.if %18 {
      %c0_31 = arith.constant 0 : index
      %c0_32 = arith.constant 0 : index
      %c0_33 = arith.constant 0 : index
      %42 = vector.load %arg2[%c0_31, %c0_32, %c0_33] : memref<1x8x522xf32, #tpu.memory_space<vmem>>, vector<1x8x512xf32>
      %43 = vector.shape_cast %42 : vector<1x8x512xf32> to vector<8x512xf32>
      %c0_34 = arith.constant 0 : index
      %c0_35 = arith.constant 0 : index
      %44 = vector.load %arg6[%c0_34, %c0_35] : memref<24x512xf32, #tpu.memory_space<vmem>>, vector<8x512xf32>
      tpu.vector_store %arg6[%c0_34, %c0_35], %43 {strides = array<i32>} : memref<24x512xf32, #tpu.memory_space<vmem>>, vector<8x512xf32>,
      %c0_36 = arith.constant 0 : index
      %c0_37 = arith.constant 0 : index
      %c1 = arith.constant 1 : index
      %45 = vector.load %arg2[%c0_36, %c0_37, %c1] : memref<1x8x522xf32, #tpu.memory_space<vmem>>, vector<1x8x512xf32>
      %46 = vector.shape_cast %45 : vector<1x8x512xf32> to vector<8x512xf32>
      %c8 = arith.constant 8 : index
      %c0_38 = arith.constant 0 : index
      %47 = vector.load %arg6[%c8, %c0_38] : memref<24x512xf32, #tpu.memory_space<vmem>>, vector<8x512xf32>
      tpu.vector_store %arg6[%c8, %c0_38], %46 {strides = array<i32>} : memref<24x512xf32, #tpu.memory_space<vmem>>, vector<8x512xf32>,
      %c0_39 = arith.constant 0 : index
      %c0_40 = arith.constant 0 : index
      %c2 = arith.constant 2 : index
      %48 = vector.load %arg2[%c0_39, %c0_40, %c2] : memref<1x8x522xf32, #tpu.memory_space<vmem>>, vector<1x8x512xf32>
      %49 = vector.shape_cast %48 : vector<1x8x512xf32> to vector<8x512xf32>
      %c16 = arith.constant 16 : index
      %c0_41 = arith.constant 0 : index
      %50 = vector.load %arg6[%c16, %c0_41] : memref<24x512xf32, #tpu.memory_space<vmem>>, vector<8x512xf32>
      tpu.vector_store %arg6[%c16, %c0_41], %49 {strides = array<i32>} : memref<24x512xf32, #tpu.memory_space<vmem>>, vector<8x512xf32>,
    } else {
    }
    %c0_9 = arith.constant 0 : index
    %c0_10 = arith.constant 0 : index
    %19 = vector.load %arg6[%c0_9, %c0_10] : memref<24x512xf32, #tpu.memory_space<vmem>>, vector<24x384xf32>
    %20 = vector.extract_strided_slice %15 {offsets = [0, 0, 0], sizes = [1, 8, 24], strides = [1, 1, 1]} : vector<3x8x24xf32> to vector<1x8x24xf32>
    %21 = vector.shape_cast %20 : vector<1x8x24xf32> to vector<8x24xf32>
    %cst_11 = arith.constant dense<0.000000e+00> : vector<8x384xf32>
    %22 = tpu.matmul %21, %19, %cst_11 {dimension_numbers = #tpu.dot_dimension_numbers<[1], [0], [0], [1], [0, 0, 1, 1], [], []>} : vector<8x24xf32>, vector<24x384xf32>, vector<8x384xf32> -> vector<8x384xf32>
    %c0_12 = arith.constant 0 : index
    %c0_13 = arith.constant 0 : index
    %23 = vector.load %arg7[%c0_12, %c0_13] : memref<8x384xf32, #tpu.memory_space<vmem>>, vector<8x384xf32>
    tpu.vector_store %arg7[%c0_12, %c0_13], %22 {strides = array<i32>} : memref<8x384xf32, #tpu.memory_space<vmem>>, vector<8x384xf32>,
    %c0_14 = arith.constant 0 : index
    %c18 = arith.constant 18 : index
    %24 = vector.load %arg6[%c0_14, %c18] : memref<24x512xf32, #tpu.memory_space<vmem>>, vector<24x384xf32>
    %25 = vector.extract_strided_slice %15 {offsets = [1, 0, 0], sizes = [1, 8, 24], strides = [1, 1, 1]} : vector<3x8x24xf32> to vector<1x8x24xf32>
    %26 = vector.shape_cast %25 : vector<1x8x24xf32> to vector<8x24xf32>
    %cst_15 = arith.constant dense<0.000000e+00> : vector<8x384xf32>
    %27 = tpu.matmul %26, %24, %cst_15 {dimension_numbers = #tpu.dot_dimension_numbers<[1], [0], [0], [1], [0, 0, 1, 1], [], []>} : vector<8x24xf32>, vector<24x384xf32>, vector<8x384xf32> -> vector<8x384xf32>
    %c0_16 = arith.constant 0 : index
    %c0_17 = arith.constant 0 : index
    %28 = vector.load %arg7[%c0_16, %c0_17] : memref<8x384xf32, #tpu.memory_space<vmem>>, vector<8x384xf32>
    %29 = arith.addf %28, %27 : vector<8x384xf32>
    %c0_18 = arith.constant 0 : index
    %c0_19 = arith.constant 0 : index
    %30 = vector.load %arg7[%c0_18, %c0_19] : memref<8x384xf32, #tpu.memory_space<vmem>>, vector<8x384xf32>
    tpu.vector_store %arg7[%c0_18, %c0_19], %29 {strides = array<i32>} : memref<8x384xf32, #tpu.memory_space<vmem>>, vector<8x384xf32>,
    %c0_20 = arith.constant 0 : index
    %c36 = arith.constant 36 : index
    %31 = vector.load %arg6[%c0_20, %c36] : memref<24x512xf32, #tpu.memory_space<vmem>>, vector<24x384xf32>
    %32 = vector.extract_strided_slice %15 {offsets = [2, 0, 0], sizes = [1, 8, 24], strides = [1, 1, 1]} : vector<3x8x24xf32> to vector<1x8x24xf32>
    %33 = vector.shape_cast %32 : vector<1x8x24xf32> to vector<8x24xf32>
    %cst_21 = arith.constant dense<0.000000e+00> : vector<8x384xf32>
    %34 = tpu.matmul %33, %31, %cst_21 {dimension_numbers = #tpu.dot_dimension_numbers<[1], [0], [0], [1], [0, 0, 1, 1], [], []>} : vector<8x24xf32>, vector<24x384xf32>, vector<8x384xf32> -> vector<8x384xf32>
    %c0_22 = arith.constant 0 : index
    %c0_23 = arith.constant 0 : index
    %35 = vector.load %arg7[%c0_22, %c0_23] : memref<8x384xf32, #tpu.memory_space<vmem>>, vector<8x384xf32>
    %36 = arith.addf %35, %34 : vector<8x384xf32>
    %c0_24 = arith.constant 0 : index
    %c0_25 = arith.constant 0 : index
    %37 = vector.load %arg7[%c0_24, %c0_25] : memref<8x384xf32, #tpu.memory_space<vmem>>, vector<8x384xf32>
    tpu.vector_store %arg7[%c0_24, %c0_25], %36 {strides = array<i32>} : memref<8x384xf32, #tpu.memory_space<vmem>>, vector<8x384xf32>,
    %c0_26 = arith.constant 0 : index
    %c0_27 = arith.constant 0 : index
    %38 = vector.load %arg7[%c0_26, %c0_27] : memref<8x384xf32, #tpu.memory_space<vmem>>, vector<8x384xf32>
    %c0_28 = arith.constant 0 : index
    %c0_29 = arith.constant 0 : index
    %c0_30 = arith.constant 0 : index
    %39 = vector.load %arg5[%c0_28, %c0_29, %c0_30] : memref<1x8x384xf32, #tpu.memory_space<vmem>>, vector<1x8x384xf32>
    %40 = vector.shape_cast %39 : vector<1x8x384xf32> to vector<8x384xf32>
    %41 = vector.shape_cast %38 : vector<8x384xf32> to vector<1x8x384xf32>
    tpu.vector_store %arg5[%c0_28, %c0_29, %c0_30], %41 {strides = array<i32>} : memref<1x8x384xf32, #tpu.memory_space<vmem>>, vector<1x8x384xf32>,
    return
  }
  func.func @transform_0(%arg0: i32, %arg1: i32) -> (i32, i32, i32) {
    %c0_i32 = arith.constant 0 : i32
    %c0_i32_0 = arith.constant 0 : i32
    %c0_i32_1 = arith.constant 0 : i32
    return %arg0, %c0_i32, %c0_i32_0 : i32, i32, i32
  }
  func.func @transform_1(%arg0: i32, %arg1: i32) -> (i32, i32, i32) {
    %c0_i32 = arith.constant 0 : i32
    %c0_i32_0 = arith.constant 0 : i32
    %c0_i32_1 = arith.constant 0 : i32
    return %arg0, %c0_i32, %c0_i32_0 : i32, i32, i32
  }
  func.func @transform_2(%arg0: i32, %arg1: i32) -> (i32, i32, i32) {
    %c0_i32 = arith.constant 0 : i32
    %c0_i32_0 = arith.constant 0 : i32
    %c0_i32_1 = arith.constant 0 : i32
    return %c0_i32, %arg1, %c0_i32_0 : i32, i32, i32
  }
  func.func @transform_3(%arg0: i32, %arg1: i32) -> (i32, i32, i32) {
    %c0_i32 = arith.constant 0 : i32
    %c0_i32_0 = arith.constant 0 : i32
    return %arg0, %arg1, %c0_i32 : i32, i32, i32
  }
}

</mosaic_0001>

<bundles_post_ra>
// kernel: conv2dmod_pallas.1
= control target key start
LH: loop header
LB: loop body
LE: loop exit
PB: predicated region body
PF: predicated region fallthrough
CT: control target
= control target key end

     0   :  { %s1185_s12 = smov 0   ;;  %s1187_s13 = smov 0   ;;  %s1363_s0 = inlined_call_operand.vmem [shape: f32[2,8,522], index: 0, kind: input, shape index: {}]   ;;  %s1364_s1 = inlined_call_operand.vmem [shape: f32[2,1,24], index: 1, kind: input, shape index: {}]   ;;  %s1365_s2 = inlined_call_operand.vmem [shape: f32[3,8,24], index: 2, kind: input, shape index: {}]   ;;  %s1366_s3 = inlined_call_operand.vmem [shape: f32[2,8,384], index: 3, kind: output, shape index: {}]  }
   0x1   :  { %s1189_s14 = smov 0  }
   0x2 LB: > { %s25_s15 = sadd.s32 1, %s1153_s13  ;;  %p1051_p0 = scmp.ge.s32.totalorder %s1157_s14, 1  ;;  %s1157_s14 = sphi %s1189_s14, %s13_s14   ;;  %s1153_s13 = sphi %s1187_s13, %s1368_s13   ;;  %s1149_s12 = sphi %s1185_s12, %s1367_s12  }
   0x3   : > { %p27_p1 = scmp.ge.s32.totalorder %s25_s15, 2  ;;  %p168_p2 = scmp.lt.s32.totalorder %s1157_s14, 3 }
   0x5   : > { %s1370_s15 = smov (%p27_p1, %s25_s15), 0  ;;  %p169_p3 = pnand %p1051_p0, %p168_p2 }
   0x6   : > { %p203_p4 = scmp.lt.s32.totalorder (!%p169_p3), %s1149_s12, 1  ;;  %s1160_s20 = smov (!%p169_p3), 126  }
   0x7   : > { %172 = sbr.rel (%p169_p3) target bundleno = 489 (0x1e9), region = 32  ;;  %s1161_s21 = smov (!%p169_p3), 127  }
   0x8   : > { %s1162_s4 = smov (!%p169_p3), 110   ;;  %s1163_s5 = smov (!%p169_p3), 92  }
   0xc   : > { %s1372_s12 = smov (!%p203_p4, %s1149_s12), 1  ;;  %v1159_v0 = vmov 0.0   ;;  %v230_v6 = vlaneseq  ;;  %v226_v12 = vld [vmem:[%s1365_s2] sm:$0xff]  ;;  %v228_v14 = vld [vmem:[%s1365_s2 + $0x10] sm:$0xff]  ;;  %v227_v15 = vld [vmem:[%s1365_s2 + $0x8] sm:$0xff]  ;;  %vm241_vm0 = vcmask 195584  }
   0xd   : > { %1074 = vmatprep.subr.mxu1 %v1159_v0  ;;  %412 = vmatprep.mubr.f32.mxu0 %v1159_v0  ;;  %s1101_s16 = smul.u32 40, %s1372_s12  ;;  %s210_s24 = scalar_lea.vmem %s1364_s1, %s1372_s12  ;;  %vm1164_vm1 = vmmov 0   ;;  %vm323_vm2 = vcmask 1031168   ;;  %vm290_vm3 = vcmask 1039360   ;;  %vm540_vm4 = vcmask 900096  }
   0xe   : > { %v231_v7 = vshrl.u32 %v230_v6, 7  ;;  %v224_v8 = vld [vmem:[%s210_s24] sm:$0x1]  ;;  %1080 = vmatprep.mubr.msk.f32.mxu1 %vm1164_vm1, %v1159_v0  ;;  %vm760_vm5 = vcmask 752640   ;;  %s1102_s6 = smul.u32 24, %s1372_s12 }
   0xf   : > { %s207_s19 = scalar_lea.vmem %s1363_s0, %s1101_s16  ;;  %v225_v9 = vadd.f32 1.0, %v224_v8 }
  0x10   : > { %v1211_v1 = vld [vmem:[%s207_s19 + $0x18] sm:$0xff]  ;;  %v1213_v2 = vld [vmem:[%s207_s19 + $0x8] sm:$0xff]  ;;  %v1217_v3 = vld [vmem:[%s207_s19 + $0x10] sm:$0xff]  ;;  %v232_v10 = vsub.s32 0, %v231_v7  ;;  %s223_s9 = scalar_lea.vmem %s1366_s3, %s1102_s6 }
  0x11   : > { %319 = vrot.lane.b32.xlu1 %v1211_v1, %s1160_s20  ;;  %315 = vrot.lane.b32.xlu0 %v1213_v2, %s1160_s20  ;;  %v1219_v4 = vld [vmem:[%s207_s19] sm:$0xff] }
  0x12   : > { %v307_v5 = vld [vmem:[%s207_s19 + $0x20] sm:$0xff]  ;;  %v233_v11 = vrot.slane %v225_v9, %v232_v10 }
  0x14   : > { %v1234_v13 = vmul.f32 %v233_v11, %v226_v12  ;;  %v1244_v17 = vmul.f32 %v233_v11, %v228_v14  ;;  %v1246_v18 = vmul.f32 %v233_v11, %v227_v15 }
  0x15   : > { %317 = vrot.lane.b32.xlu0 %v1217_v3, %s1160_s20  ;;  %313 = vrot.lane.b32.xlu1 %v1219_v4, %s1160_s20 }
  0x16   : > { %v238_v16 = vmul.f32 %v1234_v13, %v1234_v13  ;;  %v240_v20 = vmul.f32 %v1244_v17, %v1244_v17  ;;  %v239_v21 = vmul.f32 %v1246_v18, %v1246_v18 }
  0x18   : > { %v242_v19 = vsel %vm241_vm0, %v238_v16, 0.0  ;;  %v248_v22 = vsel %vm241_vm0, %v240_v20, 0.0  ;;  %v245_v23 = vsel %vm241_vm0, %v239_v21, 0.0 }
  0x19   : > { %284 = vrot.lane.b32.xlu1 %v1217_v3, %s1161_s21  ;;  %282 = vrot.lane.b32.xlu0 %v1213_v2, %s1161_s21 }
  0x1d   : > { %286 = vrot.lane.b32.xlu0 %v1211_v1, %s1161_s21  ;;  %280 = vrot.lane.b32.xlu1 %v1219_v4, %s1161_s21 }
  0x21   : > { %321 = vrot.lane.b32.xlu0 %v307_v5, %s1160_s20  ;;  %288 = vrot.lane.b32.xlu1 %v307_v5, %s1161_s21 }
  0x40   : > { %243 = vadd.xlane.f32.xlu0 %v242_v19 }
  0x44   : > { %249 = vadd.xlane.f32.xlu0 %v248_v22 }
  0x45   : > { %246 = vadd.xlane.f32.xlu1 %v245_v23 }
  0x56   : > { %520 = vrot.lane.b32.xlu1 %v1217_v3, %s1162_s4 }
  0x5a   : > { %518 = vrot.lane.b32.xlu0 %v1213_v2, %s1162_s4  ;;  %740 = vrot.lane.b32.xlu1 %v1217_v3, %s1163_s5 }
  0x5e   : > { %516 = vrot.lane.b32.xlu0 %v1219_v4, %s1162_s4 }
  0x62   : > { %522 = vrot.lane.b32.xlu0 %v1211_v1, %s1162_s4 }
  0x66   : > { %738 = vrot.lane.b32.xlu0 %v1213_v2, %s1163_s5 }
  0x6a   : > { %736 = vrot.lane.b32.xlu0 %v1219_v4, %s1163_s5 }
  0x83   : > { %v320_v24 = vpop.permute.xlu1 %319  ;;  %v316_v25 = vpop.permute.xlu0 %315 }
  0x87   : > { %v318_v26 = vpop.permute.xlu0 %317  ;;  %v314_v27 = vpop.permute.xlu1 %313 }
  0x88   : > { %v325_v28 = vsel %vm323_vm2, %v316_v25, %v318_v26  ;;  %v326_v29 = vsel %vm323_vm2, %v318_v26, %v320_v24  ;;  %v324_v30 = vsel %vm323_vm2, %v314_v27, %v316_v25 }
  0x89   : > { %374 = vmatprep.subr.mxu0 %v325_v28  ;;  %1075 = vmatpush3.msra.mxu1 %v326_v29 }
  0x8a   : > { %536 = vrot.lane.b32.xlu1 %v326_v29, %s1162_s4  ;;  %534 = vrot.lane.b32.xlu0 %v325_v28, %s1162_s4 }
  0x8b   : > { %375 = vmatpush1.msra.mxu0 %v324_v30  ;;  %v285_v31 = vpop.permute.xlu1 %284  ;;  %v283_v32 = vpop.permute.xlu0 %282  ;;  %1076 = vmatprep.subr.mxu1 %v1159_v0 }
  0x8c   : > { %v292_v33 = vsel %vm290_vm3, %v283_v32, %v285_v31 }
  0x8d   : > { %376 = vmatprep.subr.mxu0 %v292_v33 }
  0x8e   : > { %532 = vrot.lane.b32.xlu1 %v324_v30, %s1162_s4  ;;  %526 = vrot.lane.b32.xlu0 %v292_v33, %s1162_s4 }
  0x8f   : > { %v287_v34 = vpop.permute.xlu0 %286  ;;  %v281_v35 = vpop.permute.xlu1 %280 }
  0x90   : > { %v291_v36 = vsel %vm290_vm3, %v281_v35, %v283_v32  ;;  %v293_v37 = vsel %vm290_vm3, %v285_v31, %v287_v34 }
  0x91   : > { %377 = vmatpush1.msra.mxu0 %v291_v36  ;;  %1077 = vmatpush3.msra.mxu1 %v293_v37 }
  0x92   : > { %528 = vrot.lane.b32.xlu1 %v293_v37, %s1162_s4  ;;  %524 = vrot.lane.b32.xlu0 %v291_v36, %s1162_s4 }
  0x93   : > { %v322_v38 = vpop.permute.xlu0 %321  ;;  %378 = vmatprep.subr.mxu0 %v1213_v2  ;;  %1078 = vmatprep.subr.mxu1 %v1159_v0  ;;  %v289_v40 = vpop.permute.xlu1 %288 }
  0x94   : > { %v327_v39 = vsel %vm323_vm2, %v320_v24, %v322_v38  ;;  %379 = vmatpush1.msra.mxu0 %v1219_v4  ;;  %1079 = vmatpush3.msra.mxu1 %v1217_v3  ;;  %v294_v41 = vsel %vm290_vm3, %v287_v34, %v289_v40 }
  0x95   : > { %1083 = vmatprep.subr.mxu1 %v1159_v0 }
  0x96   : > { %538 = vrot.lane.b32.xlu1 %v327_v39, %s1162_s4  ;;  %754 = vrot.lane.b32.xlu0 %v325_v28, %s1163_s5 }
  0x9a   : > { %530 = vrot.lane.b32.xlu1 %v294_v41, %s1162_s4  ;;  %746 = vrot.lane.b32.xlu0 %v292_v33, %s1163_s5 }
  0x9e   : > { %756 = vrot.lane.b32.xlu1 %v326_v29, %s1163_s5  ;;  %744 = vrot.lane.b32.xlu0 %v291_v36, %s1163_s5 }
  0xa2   : > { %752 = vrot.lane.b32.xlu1 %v324_v30, %s1163_s5  ;;  %742 = vrot.lane.b32.xlu0 %v1211_v1, %s1163_s5 }
  0xa6   : > { %748 = vrot.lane.b32.xlu1 %v293_v37, %s1163_s5 }
  0xaa   : > { %758 = vrot.lane.b32.xlu1 %v327_v39, %s1163_s5 }
  0xae   : > { %750 = vrot.lane.b32.xlu1 %v294_v41, %s1163_s5 }
  0xc9   : > { %v244_v42 = vpop.xlane.xlu0 %243 }
  0xcd   : > { %v250_v45 = vpop.xlane.xlu0 %249 }
  0xce   : > { %v247_v43 = vpop.xlane.xlu1 %246 }
  0xcf   : > { %v251_v44 = vadd.f32 %v247_v43, %v244_v42 }
  0xd1   : > { %v252_v46 = vadd.f32 %v251_v44, %v250_v45  ;;  %v519_v48 = vpop.permute.xlu0 %518 }
  0xd2   : > { %v521_v53 = vpop.permute.xlu1 %520 }
  0xd3   : > { %v253_v47 = vadd.f32 1e-08, %v252_v46  ;;  %v542_v4 = vsel %vm540_vm4, %v519_v48, %v521_v53 }
  0xd5   : > { %1133 = vrsqrt.f32 %v253_v47  ;;  %v517_v51 = vpop.permute.xlu0 %516 }
  0xd6   : > { %v1312_v55 = vpop.permute.xlu1 %740  ;;  %v541_v5 = vsel %vm540_vm4, %v517_v51, %v519_v48 }
  0xd9   : > { %v523_v52 = vpop.permute.xlu0 %522 }
  0xda   : > { %v543_v12 = vsel %vm540_vm4, %v521_v53, %v523_v52 }
  0xdd   : > { %v739_v54 = vpop.permute.xlu0 %738 }
  0xde   : > { %v762_v23 = vsel %vm760_vm5, %v739_v54, %v1312_v55 }
  0xe1   : > { %v737_v56 = vpop.permute.xlu0 %736 }
  0xe2   : > { %v1303_v49 = vpop.eup %1133  ;;  %v761_v24 = vsel %vm760_vm5, %v737_v56, %v739_v54 }
  0xe3   : > { %v255_v50 = vmul.f32 %v1303_v49, %v1234_v13  ;;  %v256_v7 = vmul.f32 %v1303_v49, %v1246_v18  ;;  %v257_v26 = vmul.f32 %v1303_v49, %v1244_v17 }
  0xe5   : > { %1054 = vmatmul.mubr.msk.f32.vlgmr.msra.gmra.mxu0 %vm241_vm0, %v255_v50  ;;  %1081 = vmatmul.mubr.msk.f32.vlgmr.msra.gmra.mxu1 %vm241_vm0, %v255_v50 }
  0xe6   : > { %626 = vmatprep.mubr.f32.mxu0 %v1159_v0  ;;  %1089 = vmatprep.mubr.msk.f32.mxu1 %vm1164_vm1, %v1159_v0 }
  0xfc   : > { %v537_v57 = vpop.permute.xlu1 %536  ;;  %v535_v58 = vpop.permute.xlu0 %534 }
  0xfd   : > { %v548_v59 = vsel %vm540_vm4, %v535_v58, %v537_v57 }
  0xfe   : > { %588 = vmatprep.subr.mxu0 %v548_v59 }
 0x100   : > { %v533_v60 = vpop.permute.xlu1 %532  ;;  %v527_v61 = vpop.permute.xlu0 %526 }
 0x101   : > { %v547_v62 = vsel %vm540_vm4, %v533_v60, %v535_v58 }
 0x102   : > { %589 = vmatpush1.msra.mxu0 %v547_v62 }
 0x104   : > { %v529_v63 = vpop.permute.xlu1 %528  ;;  %v525_v1 = vpop.permute.xlu0 %524 }
 0x105   : > { %v544_v2 = vsel %vm540_vm4, %v525_v1, %v527_v61  ;;  %v545_v3 = vsel %vm540_vm4, %v527_v61, %v529_v63 }
 0x106   : > { %590 = vmatprep.subr.mxu0 %v545_v3 }
 0x107   : > { %591 = vmatpush1.msra.mxu0 %v544_v2 }
 0x108   : > { %v539_v6 = vpop.permute.xlu1 %538  ;;  %592 = vmatprep.subr.mxu0 %v542_v4  ;;  %v755_v9 = vpop.permute.xlu0 %754 }
 0x109   : > { %v549_v8 = vsel %vm540_vm4, %v537_v57, %v539_v6  ;;  %593 = vmatpush1.msra.mxu0 %v541_v5 }
 0x10a   : > { %1056 = vmatmul.mubr.msk.f32.vlgmr.msra.gmra.mxu0 %vm241_vm0, %v256_v7  ;;  %1084 = vmatpush3.msra.mxu1 %v549_v8 }
 0x10b   : > { %1085 = vmatprep.subr.mxu1 %v1159_v0  ;;  %846 = vmatprep.mubr.f32.mxu0 %v1159_v0 }
 0x10c   : > { %v531_v10 = vpop.permute.xlu1 %530  ;;  %v747_v14 = vpop.permute.xlu0 %746 }
 0x10d   : > { %v546_v11 = vsel %vm540_vm4, %v529_v63, %v531_v10 }
 0x10e   : > { %1086 = vmatpush3.msra.mxu1 %v546_v11 }
 0x10f   : > { %1087 = vmatprep.subr.mxu1 %v1159_v0 }
 0x110   : > { %v757_v13 = vpop.permute.xlu1 %756  ;;  %1088 = vmatpush3.msra.mxu1 %v543_v12  ;;  %v745_v19 = vpop.permute.xlu0 %744 }
 0x111   : > { %1090 = vmatmul.mubr.msk.f32.vlgmr.msra.gmra.mxu1 %vm241_vm0, %v256_v7  ;;  %v768_v15 = vsel %vm760_vm5, %v755_v9, %v757_v13  ;;  %1092 = vmatprep.subr.mxu1 %v1159_v0  ;;  %v764_v22 = vsel %vm760_vm5, %v745_v19, %v747_v14 }
 0x112   : > { %808 = vmatprep.subr.mxu0 %v768_v15  ;;  %1098 = vmatprep.mubr.msk.f32.mxu1 %vm1164_vm1, %v1159_v0 }
 0x114   : > { %v753_v16 = vpop.permute.xlu1 %752  ;;  %v743_v28 = vpop.permute.xlu0 %742 }
 0x115   : > { %v767_v18 = vsel %vm760_vm5, %v753_v16, %v755_v9  ;;  %v763_v31 = vsel %vm760_vm5, %v1312_v55, %v743_v28 }
 0x116   : > { %809 = vmatpush1.msra.mxu0 %v767_v18 }
 0x118   : > { %v749_v20 = vpop.permute.xlu1 %748 }
 0x119   : > { %v765_v21 = vsel %vm760_vm5, %v747_v14, %v749_v20 }
 0x11a   : > { %810 = vmatprep.subr.mxu0 %v765_v21 }
 0x11b   : > { %811 = vmatpush1.msra.mxu0 %v764_v22 }
 0x11c   : > { %v759_v25 = vpop.permute.xlu1 %758  ;;  %812 = vmatprep.subr.mxu0 %v762_v23 }
 0x11d   : > { %v769_v27 = vsel %vm760_vm5, %v757_v13, %v759_v25  ;;  %813 = vmatpush1.msra.mxu0 %v761_v24 }
 0x11e   : > { %1058 = vmatmul.mubr.msk.f32.vlgmr.msra.gmra.mxu0 %vm241_vm0, %v257_v26  ;;  %1093 = vmatpush3.msra.mxu1 %v769_v27 }
 0x11f   : > { %1094 = vmatprep.subr.mxu1 %v1159_v0 }
 0x120   : > { %v751_v29 = vpop.permute.xlu1 %750 }
 0x121   : > { %v766_v30 = vsel %vm760_vm5, %v749_v20, %v751_v29 }
 0x122   : > { %1095 = vmatpush3.msra.mxu1 %v766_v30 }
 0x123   : > { %1096 = vmatprep.subr.mxu1 %v1159_v0 }
 0x124   : > { %1097 = vmatpush3.msra.mxu1 %v763_v31 }
 0x125   : > { %1099 = vmatmul.mubr.msk.f32.vlgmr.msra.gmra.mxu1 %vm241_vm0, %v257_v26 }
 0x1a5   : > { %v485_v17 = vpop.f32.mrf.mxu1  ;;  %v414_v34 = vpop.f32.mrf.mxu0 }
 0x1a7   : > { %v1082_v32 = vpop.f32.mrf.mxu1  ;;  %v416_v36 = vpop.f32.mrf.mxu0 }
 0x1ca   : > { %v628_v37 = vpop.f32.mrf.mxu0 }
 0x1cb   : > { %v706_v39 = vadd.f32 %v628_v37, %v414_v34 }
 0x1cc   : > { %v630_v38 = vpop.f32.mrf.mxu0 }
 0x1cd   : > { %v707_v41 = vadd.f32 %v630_v38, %v416_v36 }
 0x1d1   : > { %v699_v33 = vpop.f32.mrf.mxu1 }
 0x1d2   : > { %v708_v44 = vadd.f32 %v699_v33, %v485_v17 }
 0x1d3   : > { %v1091_v35 = vpop.f32.mrf.mxu1 }
 0x1de   : > { %v848_v40 = vpop.f32.mrf.mxu0 }
 0x1df   : > { %v926_v0 = vadd.f32 %v848_v40, %v706_v39 }
 0x1e0   : > { %v850_v42 = vpop.f32.mrf.mxu0 }
 0x1e1   : > { %935 = vst [vmem:[%s223_s9] sm:$0xff] %v926_v0  ;;  %v927_v43 = vadd.f32 %v850_v42, %v707_v41 }
 0x1e3   : > { %936 = vst [vmem:[%s223_s9 + $0x8] sm:$0xff] %v927_v43 }
 0x1e5   : > { %v919_v45 = vpop.f32.mrf.mxu1 }
 0x1e6   : > { %v928_v46 = vadd.f32 %v919_v45, %v708_v44 }
 0x1e7   : > { %v1100_v47 = vpop.f32.mrf.mxu1 }
 0x1e8   : > { %937 = vst [vmem:[%s223_s9 + $0x10] sm:$0xff] %v928_v46 }
 0x1e9 PF: > { %s13_s14 = sadd.s32 1, %s1157_s14   ;;  %s1367_s12 = smov %s1153_s13 }
 0x1ea   : > { %p10_p5 = scmp.ge.s32.totalorder %s13_s14, 4   ;;  %s1368_s13 = smov %s1370_s15 }
 0x1ec   :  { %12 = sbr.rel (!%p10_p5) target bundleno = 2 (0x2), region = 72 }

</bundles_post_ra>
